<compile_context>
chip_gen: v7x
topology: tpu7x:2x2x1
jax: 0.10.0
libtpu: 0.0.40
codegen_flags: <defaults>
</compile_context>

<pallas_src>
import jax
import jax.numpy as jnp
from jax.experimental import pallas as pl
from jax.experimental.pallas import tpu as pltpu


def _gcn_kernel(adj_ref, x_ref, y_ref, inv_ref, w_ref, b_ref, o_ref, acc_ref):
    k = pl.program_id(1)

    @pl.when(k == 0)
    def _init():
        acc_ref[...] = jnp.zeros_like(acc_ref)

    # Dominant contraction: accumulate this row-tile of (adj @ x) over the
    # adjacency-column axis.  If adj is stored bf16 (exact for 0/1 adjacency)
    # the upcast runs on the VPU and is hidden under the adj DMA.
    x_tile = x_ref[...]
    adj_tile = adj_ref[...].astype(x_tile.dtype)
    acc_ref[...] += jnp.dot(adj_tile, x_tile,
                            preferred_element_type=jnp.float32)

    @pl.when(k == pl.num_programs(1) - 1)
    def _finalize():
        agg = acc_ref[...] * inv_ref[...]                  # row-normalize (mean)
        combined = agg + y_ref[...].astype(jnp.float32)    # add "self" features
        out = jnp.dot(combined.astype(w_ref.dtype), w_ref[...],
                      preferred_element_type=jnp.float32)
        out = out + b_ref[...].astype(jnp.float32)
        o_ref[...] = jnp.maximum(out, 0.0).astype(o_ref.dtype)


def _round_up(a, m):
    return ((a + m - 1) // m) * m


def gcn_custom_forward(x, y, adj, adj_sumrow, weight, bias, dropout=0.0,
                       *, tm=512, tk=1024, adj_storage_dtype=None,
                       matmul_dtype=None):
    """relu(GraphConvolutionCustom(x, y, adj, adj_sumrow)); dropout is identity
    for p == 0 / eval mode.

    adj_storage_dtype: optional HBM storage dtype for the adjacency (e.g.
        jnp.bfloat16 -- exact for 0/1 adjacency, halves the dominant HBM read).
    matmul_dtype: optional dtype for x/y/W on the MXU (f32 accumulation kept).
    """
    # TODO(synk): training-mode dropout (p > 0) is not implemented in-kernel;
    # it is the identity for p == 0 and eval-mode inference.
    del dropout

    n, d_in = x.shape
    d_out = weight.shape[1]
    bias = jnp.reshape(bias, (1, d_out))

    # Tile sizes: rows multiple of 8, reduction (adj columns) multiple of 128.
    tm = min(tm, _round_up(n, 8))
    tk = min(tk, _round_up(n, 128))
    nr = _round_up(n, tm)            # padded output rows
    nc = _round_up(n, tk)            # padded reduction extent
    dpad = _round_up(d_out, 128)     # lane-dense output width

    f32 = jnp.float32
    adj_p = jnp.zeros((nr, nc), adj.dtype).at[:n, :n].set(adj)
    x_p = jnp.zeros((nc, d_in), x.dtype).at[:n, :].set(x)
    y_p = jnp.zeros((nr, d_in), y.dtype).at[:n, :].set(y)
    # Precompute per-row 1/sumrow; pad with 1.0 so padded rows stay finite.
    inv_p = jnp.ones((nr, 1), f32).at[:n, :].set(
        1.0 / adj_sumrow.astype(f32).reshape(n, 1))
    w_p = jnp.zeros((d_in, dpad), weight.dtype).at[:, :d_out].set(weight)
    b_p = jnp.zeros((1, dpad), f32).at[:, :d_out].set(bias.astype(f32))

    if adj_storage_dtype is not None:
        # 0/1 adjacency is exact in bf16; kernel upcasts before the f32 dot.
        adj_p = adj_p.astype(adj_storage_dtype)
    if matmul_dtype is not None:
        adj_p = adj_p.astype(matmul_dtype)
        x_p = x_p.astype(matmul_dtype)
        y_p = y_p.astype(matmul_dtype)
        w_p = w_p.astype(matmul_dtype)

    grid = (nr // tm, nc // tk)
    adj_bytes = adj_p.size * jnp.dtype(adj_p.dtype).itemsize
    feat_bytes = ((x_p.size + y_p.size + w_p.size)
                  * jnp.dtype(x_p.dtype).itemsize)
    cost = pl.CostEstimate(
        flops=2 * nr * nc * d_in + 2 * nr * d_in * dpad,
        transcendentals=0,
        bytes_accessed=int(adj_bytes + feat_bytes + nr * dpad * 4),
    )

    out = pl.pallas_call(
        _gcn_kernel,
        out_shape=jax.ShapeDtypeStruct((nr, dpad), f32),
        grid_spec=pltpu.PrefetchScalarGridSpec(
            num_scalar_prefetch=0,
            grid=grid,
            in_specs=[
                pl.BlockSpec((tm, tk), lambda i, k: (i, k)),       # adj tile
                pl.BlockSpec((tk, d_in), lambda i, k: (k, 0)),     # x tile
                pl.BlockSpec((tm, d_in), lambda i, k: (i, 0)),     # y tile
                pl.BlockSpec((tm, 1), lambda i, k: (i, 0)),        # 1/sumrow
                pl.BlockSpec((d_in, dpad), lambda i, k: (0, 0)),   # W (resident)
                pl.BlockSpec((1, dpad), lambda i, k: (0, 0)),      # bias
            ],
            out_specs=pl.BlockSpec((tm, dpad), lambda i, k: (i, 0)),
            scratch_shapes=[pltpu.VMEM((tm, d_in), jnp.float32)],
        ),
        compiler_params=pltpu.CompilerParams(
            dimension_semantics=("parallel", "arbitrary"),
            vmem_limit_bytes=32 * 1024 * 1024,   # fits v5e/v6e/v7x budgets
        ),
        cost_estimate=cost,
    )(adj_p, x_p, y_p, inv_p, w_p, b_p)

    return out[:n, :d_out]


def _reference(x, y, adj, adj_sumrow, weight, bias):
    # Original (un-reassociated) formula, for verification.
    support = x @ weight
    agg = (adj @ support) / adj_sumrow
    return jnp.maximum(agg + y @ weight + bias, 0.0)


def _make_inputs(key, n, d_in, d_out):
    k_x, k_y, k_adj, k_w, k_b = jax.random.split(key, 5)
    x = jax.random.normal(k_x, (n, d_in), dtype=jnp.float32)
    y = jax.random.normal(k_y, (n, d_in), dtype=jnp.float32)
    # Dense 0/1 adjacency with self-loops so every row-sum > 0.
    adj = (jax.random.uniform(k_adj, (n, n)) < 0.3).astype(jnp.float32)
    adj = jnp.maximum(adj, jnp.eye(n, dtype=jnp.float32))
    adj_sumrow = jnp.sum(adj, axis=1, keepdims=True)
    stdv = 1.0 / jnp.sqrt(jnp.float32(d_out))
    weight = jax.random.uniform(k_w, (d_in, d_out), minval=-stdv, maxval=stdv,
                                dtype=jnp.float32)
    bias = jax.random.uniform(k_b, (1, d_out), minval=-stdv, maxval=stdv,
                              dtype=jnp.float32)
    return x, y, adj, adj_sumrow, weight, bias


if __name__ == "__main__":
    key = jax.random.PRNGKey(0)

    # Small shape matching the module (single grid step, pure f32 path).
    N, D_IN, D_OUT = 16, 8, 32
    x, y, adj, adj_sumrow, weight, bias = _make_inputs(key, N, D_IN, D_OUT)
    out = gcn_custom_forward(x, y, adj, adj_sumrow, weight, bias, dropout=0.0)
    out = jax.block_until_ready(out)
    ref = _reference(x, y, adj, adj_sumrow, weight, bias)
    assert out.shape == (N, D_OUT)
    assert jnp.allclose(out, ref, atol=1e-4, rtol=1e-4), "mismatch (small)"

    # Larger shape exercising padding, a multi-tile (parallel x reduction) grid
    # and bf16 adjacency storage (exact for 0/1 adjacency, halves HBM traffic).
    N2 = 200
    x2, y2, adj2, sr2, w2, b2 = _make_inputs(jax.random.PRNGKey(1), N2, D_IN, D_OUT)
    out2 = gcn_custom_forward(x2, y2, adj2, sr2, w2, b2, dropout=0.0,
                              tm=64, tk=128, adj_storage_dtype=jnp.bfloat16)
    out2 = jax.block_until_ready(out2)
    ref2 = _reference(x2, y2, adj2, sr2, w2, b2)
    assert out2.shape == (N2, D_OUT)
    assert jnp.allclose(out2, ref2, atol=1e-4, rtol=1e-4), "mismatch (tiled)"

    print("KERNEL_OK")
</pallas_src>

<mosaic_0001>
module attributes {stable_mosaic.version = 11 : i64} {
  func.func @_gcn_kernel(%arg0: i32, %arg1: i32, %arg2: memref<16x128xf32, #tpu.memory_space<vmem>>, %arg3: memref<128x8xf32, #tpu.memory_space<vmem>>, %arg4: memref<16x8xf32, #tpu.memory_space<vmem>>, %arg5: memref<16x1xf32, #tpu.memory_space<vmem>>, %arg6: memref<8x128xf32, #tpu.memory_space<vmem>>, %arg7: memref<1x128xf32, #tpu.memory_space<vmem>>, %arg8: memref<16x128xf32, #tpu.memory_space<vmem>>, %arg9: memref<16x8xf32, #tpu.memory_space<vmem>>) attributes {dimension_semantics = [#tpu.dimension_semantics<parallel>, #tpu.dimension_semantics<arbitrary>], iteration_bounds = array<i64: 1, 1>, scalar_prefetch = 0 : i64, scratch_operands = 1 : i64, tpu.core_type = #tpu.core_type<tc>, window_params = [{transform_indices = @transform_0, window_bounds = array<i64: 16, 128>}, {transform_indices = @transform_1, window_bounds = array<i64: 128, 8>}, {transform_indices = @transform_2, window_bounds = array<i64: 16, 8>}, {transform_indices = @transform_3, window_bounds = array<i64: 16, 1>}, {pipeline_mode = #tpu.pipeline_mode<synchronous>, transform_indices = @transform_4, window_bounds = array<i64: 8, 128>}, {pipeline_mode = #tpu.pipeline_mode<synchronous>, transform_indices = @transform_5, window_bounds = array<i64: 1, 128>}, {transform_indices = @transform_6, window_bounds = array<i64: 16, 128>}]} {
    %c0_i32 = arith.constant 0 : i32
    %0 = arith.cmpi eq, %arg1, %c0_i32 : i32
    %1 = arith.extui %0 : i1 to i32
    %c0_i32_0 = arith.constant 0 : i32
    %2 = arith.cmpi ne, %1, %c0_i32_0 : i32
    scf.if %2 {
      %cst_10 = arith.constant 0.000000e+00 : f32
      %12 = vector.broadcast %cst_10 : f32 to vector<16x8xf32>
      %c0_11 = arith.constant 0 : index
      %c0_12 = arith.constant 0 : index
      %13 = vector.load %arg9[%c0_11, %c0_12] : memref<16x8xf32, #tpu.memory_space<vmem>>, vector<16x8xf32>
      tpu.vector_store %arg9[%c0_11, %c0_12], %12 {strides = array<i32>} : memref<16x8xf32, #tpu.memory_space<vmem>>, vector<16x8xf32>,
    } else {
    }
    %c0 = arith.constant 0 : index
    %c0_1 = arith.constant 0 : index
    %3 = vector.load %arg3[%c0, %c0_1] : memref<128x8xf32, #tpu.memory_space<vmem>>, vector<128x8xf32>
    %c0_2 = arith.constant 0 : index
    %c0_3 = arith.constant 0 : index
    %4 = vector.load %arg2[%c0_2, %c0_3] : memref<16x128xf32, #tpu.memory_space<vmem>>, vector<16x128xf32>
    %c0_4 = arith.constant 0 : index
    %c0_5 = arith.constant 0 : index
    %5 = vector.load %arg9[%c0_4, %c0_5] : memref<16x8xf32, #tpu.memory_space<vmem>>, vector<16x8xf32>
    %cst = arith.constant dense<0.000000e+00> : vector<16x8xf32>
    %6 = tpu.matmul %4, %3, %cst {dimension_numbers = #tpu.dot_dimension_numbers<[1], [0], [0], [1], [0, 0, 1, 1], [], []>} : vector<16x128xf32>, vector<128x8xf32>, vector<16x8xf32> -> vector<16x8xf32>
    %7 = arith.addf %5, %6 : vector<16x8xf32>
    %c0_6 = arith.constant 0 : index
    %c0_7 = arith.constant 0 : index
    %8 = vector.load %arg9[%c0_6, %c0_7] : memref<16x8xf32, #tpu.memory_space<vmem>>, vector<16x8xf32>
    tpu.vector_store %arg9[%c0_6, %c0_7], %7 {strides = array<i32>} : memref<16x8xf32, #tpu.memory_space<vmem>>, vector<16x8xf32>,
    %c0_i32_8 = arith.constant 0 : i32
    %9 = arith.cmpi eq, %arg1, %c0_i32_8 : i32
    %10 = arith.extui %9 : i1 to i32
    %c0_i32_9 = arith.constant 0 : i32
    %11 = arith.cmpi ne, %10, %c0_i32_9 : i32
    scf.if %11 {
      %c0_10 = arith.constant 0 : index
      %c0_11 = arith.constant 0 : index
      %12 = vector.load %arg9[%c0_10, %c0_11] : memref<16x8xf32, #tpu.memory_space<vmem>>, vector<16x8xf32>
      %c0_12 = arith.constant 0 : index
      %c0_13 = arith.constant 0 : index
      %13 = vector.load %arg5[%c0_12, %c0_13] : memref<16x1xf32, #tpu.memory_space<vmem>>, vector<16x1xf32>
      %14 = vector.broadcast %13 : vector<16x1xf32> to vector<16x8xf32>
      %15 = arith.mulf %12, %14 : vector<16x8xf32>
      %c0_14 = arith.constant 0 : index
      %c0_15 = arith.constant 0 : index
      %16 = vector.load %arg4[%c0_14, %c0_15] : memref<16x8xf32, #tpu.memory_space<vmem>>, vector<16x8xf32>
      %17 = arith.addf %15, %16 : vector<16x8xf32>
      %c0_16 = arith.constant 0 : index
      %c0_17 = arith.constant 0 : index
      %18 = vector.load %arg6[%c0_16, %c0_17] : memref<8x128xf32, #tpu.memory_space<vmem>>, vector<8x128xf32>
      %cst_18 = arith.constant dense<0.000000e+00> : vector<16x128xf32>
      %19 = tpu.matmul %17, %18, %cst_18 {dimension_numbers = #tpu.dot_dimension_numbers<[1], [0], [0], [1], [0, 0, 1, 1], [], []>} : vector<16x8xf32>, vector<8x128xf32>, vector<16x128xf32> -> vector<16x128xf32>
      %c0_19 = arith.constant 0 : index
      %c0_20 = arith.constant 0 : index
      %20 = vector.load %arg7[%c0_19, %c0_20] : memref<1x128xf32, #tpu.memory_space<vmem>>, vector<1x128xf32>
      %21 = vector.broadcast %20 : vector<1x128xf32> to vector<16x128xf32>
      %22 = arith.addf %19, %21 : vector<16x128xf32>
      %cst_21 = arith.constant 0.000000e+00 : f32
      %23 = vector.broadcast %cst_21 : f32 to vector<16x128xf32>
      %24 = arith.maximumf %22, %23 : vector<16x128xf32>
      %c0_22 = arith.constant 0 : index
      %c0_23 = arith.constant 0 : index
      %25 = vector.load %arg8[%c0_22, %c0_23] : memref<16x128xf32, #tpu.memory_space<vmem>>, vector<16x128xf32>
      tpu.vector_store %arg8[%c0_22, %c0_23], %24 {strides = array<i32>} : memref<16x128xf32, #tpu.memory_space<vmem>>, vector<16x128xf32>,
    } else {
    }
    return
  }
  func.func @transform_0(%arg0: i32, %arg1: i32) -> (i32, i32) {
    %c0_i32 = arith.constant 0 : i32
    return %arg0, %arg1 : i32, i32
  }
  func.func @transform_1(%arg0: i32, %arg1: i32) -> (i32, i32) {
    %c0_i32 = arith.constant 0 : i32
    %c0_i32_0 = arith.constant 0 : i32
    return %arg1, %c0_i32 : i32, i32
  }
  func.func @transform_2(%arg0: i32, %arg1: i32) -> (i32, i32) {
    %c0_i32 = arith.constant 0 : i32
    %c0_i32_0 = arith.constant 0 : i32
    return %arg0, %c0_i32 : i32, i32
  }
  func.func @transform_3(%arg0: i32, %arg1: i32) -> (i32, i32) {
    %c0_i32 = arith.constant 0 : i32
    %c0_i32_0 = arith.constant 0 : i32
    return %arg0, %c0_i32 : i32, i32
  }
  func.func @transform_4(%arg0: i32, %arg1: i32) -> (i32, i32) {
    %c0_i32 = arith.constant 0 : i32
    %c0_i32_0 = arith.constant 0 : i32
    %c0_i32_1 = arith.constant 0 : i32
    return %c0_i32, %c0_i32_0 : i32, i32
  }
  func.func @transform_5(%arg0: i32, %arg1: i32) -> (i32, i32) {
    %c0_i32 = arith.constant 0 : i32
    %c0_i32_0 = arith.constant 0 : i32
    %c0_i32_1 = arith.constant 0 : i32
    return %c0_i32, %c0_i32_0 : i32, i32
  }
  func.func @transform_6(%arg0: i32, %arg1: i32) -> (i32, i32) {
    %c0_i32 = arith.constant 0 : i32
    %c0_i32_0 = arith.constant 0 : i32
    return %arg0, %c0_i32 : i32, i32
  }
}

</mosaic_0001>

<bundles_post_ra>
// kernel: tpu_custom_call.1
= control target key start
LH: loop header
LB: loop body
LE: loop exit
PB: predicated region body
PF: predicated region fallthrough
CT: control target
= control target key end

     0   :  { %vm28_vm0 = vcmask 64512   ;;  %v389_v5 = vmov 0   ;;  %v390_v6 = vmov 0.0   ;;  %s519_s0 = inlined_call_operand.vmem [shape: f32[16,128], index: 0, kind: input, shape index: {}]   ;;  %s520_s1 = inlined_call_operand.vmem [shape: f32[128,8], index: 1, kind: input, shape index: {}]   ;;  %s521_s2 = inlined_call_operand.vmem [shape: f32[16,8], index: 2, kind: input, shape index: {}]   ;;  %s522_s3 = inlined_call_operand.vmem [shape: f32[16,1], index: 3, kind: input, shape index: {}]   ;;  %s523_s4 = inlined_call_operand.vmem [shape: f32[8,128], index: 4, kind: input, shape index: {}]   ;;  %s524_s5 = inlined_call_operand.vmem [shape: f32[1,128], index: 5, kind: input, shape index: {}]   ;;  %s525_s6 = inlined_call_operand.hbm [shape: f32[16,128], index: 6, kind: output, shape index: {}]  }
   0x1   :  { %v31_v0 = vld [vmem:[%s520_s1] sm:$0xff]  ;;  %v32_v1 = vld [vmem:[%s520_s1 + $0x8] sm:$0xff]  ;;  %v33_v2 = vld [vmem:[%s520_s1 + $0x10] sm:$0xff]  ;;  %364 = vset.pattern.permute.xlu0 %v389_v5  ;;  %30 = vst.msk [vmem:[#allocation2 + $0x8] sm:$0xff] %vm28_vm0, %v390_v6 }
   0x2   :  { %v327_v3 = vpack.c.bf16 %v32_v1, %v31_v0  ;;  %v34_v4 = vld [vmem:[%s520_s1 + $0x18] sm:$0xff]  ;;  %29 = vst.msk [vmem:[#allocation2] sm:$0xff] %vm28_vm0, %v390_v6  ;;  %v35_v8 = vld [vmem:[%s520_s1 + $0x20] sm:$0xff]  ;;  %v36_v9 = vld [vmem:[%s520_s1 + $0x28] sm:$0xff] }
   0x3   :  { %v331_v7 = vpack.c.bf16 %v34_v4, %v33_v2  ;;  %v335_v10 = vpack.c.bf16 %v36_v9, %v35_v8  ;;  %v37_v11 = vld [vmem:[%s520_s1 + $0x30] sm:$0xff]  ;;  %v47_v12 = vld [vmem:[%s519_s0] sm:$0xff]  ;;  %v38_v13 = vld [vmem:[%s520_s1 + $0x38] sm:$0xff] }
   0x4   :  { %328 = vmatprep.subr.bf16.mxu0 %v327_v3  ;;  %319 = vmatprep.mubr.f32.mxu0 %v47_v12  ;;  %v136_v14 = vld [vmem:[%s522_s3] sm:$0xff] }
   0x5   :  { %330 = vmatpush3.bf16.msra.mxu0 %v327_v3 }
   0x6   :  { %332 = vmatprep.subr.bf16.mxu0 %v331_v7 }
   0x7   :  { %11 = vsyncpa [#allocation4], 0  ;;  %140 = vperm.xlu0 %364, %v136_v14   ;;  %v137_v15 = vld [vmem:[%s522_s3 + $0x8] sm:$0xff]  ;;  %v339_v16 = vpack.c.bf16 %v38_v13, %v37_v11  ;;  %v39_v17 = vld [vmem:[%s520_s1 + $0x40] sm:$0xff]  ;;  %s391_s17 = smov [#allocation3]  }
   0x8   :  { %v40_v18 = vld [vmem:[%s520_s1 + $0x48] sm:$0xff]  ;;  %v41_v20 = vld [vmem:[%s520_s1 + $0x50] sm:$0xff]  ;;  %v42_v21 = vld [vmem:[%s520_s1 + $0x58] sm:$0xff]  ;;  %s252_s18 = sshll.u32 %s391_s17, 4  ;;  %s253_s18 = int_to_ptr.vmem [resolvable:$true] %s252_s18 }
   0x9   :  { %334 = vmatpush3.bf16.msra.mxu0 %v331_v7  ;;  %v343_v19 = vpack.c.bf16 %v40_v18, %v39_v17  ;;  %v347_v22 = vpack.c.bf16 %v42_v21, %v41_v20  ;;  %v43_v23 = vld [vmem:[%s520_s1 + $0x60] sm:$0xff]  ;;  %v44_v24 = vld [vmem:[%s520_s1 + $0x68] sm:$0xff]  ;;  %v45_v26 = vld [vmem:[%s520_s1 + $0x70] sm:$0xff]  ;;  %p370_p1 = scmp.lt.s32.totalorder %s253_s18, %s253_s18 }
   0xa   :  { %336 = vmatprep.subr.bf16.mxu0 %v335_v10  ;;  %v351_v25 = vpack.c.bf16 %v44_v24, %v43_v23  ;;  %v46_v27 = vld [vmem:[%s520_s1 + $0x78] sm:$0xff]  ;;  %v48_v29 = vld [vmem:[%s519_s0 + $0x8] sm:$0xff]  ;;  %v154_v30 = vld [vmem:[%s523_s4] sm:$0xff] }
   0xb   :  { %145 = vperm.xlu0 %364, %v137_v15   ;;  %v355_v28 = vpack.c.bf16 %v46_v27, %v45_v26  ;;  %322 = vmatprep.subr.mxu1 %v154_v30  ;;  %v50_v31 = vld [vmem:[#allocation2 + $0x8] sm:$0xff]  ;;  %v49_v32 = vld [vmem:[#allocation2] sm:$0xff] }
   0xc   :  { %323 = vmatpush3.msra.mxu1 %v154_v30  ;;  %v150_v42 = vld [vmem:[%s521_s2] sm:$0xff]  ;;  %v151_v44 = vld [vmem:[%s521_s2 + $0x8] sm:$0xff]  ;;  %s365_s2 = scalar_lea.vmem %s253_s18, 256 }
   0xd   :  { %338 = vmatpush3.bf16.msra.mxu0 %v335_v10  ;;  %v263_v47 = vld [vmem:[%s524_s5] ss:$0 sm:$0xff]  ;;  %p366_p0 = scmp.ne.s32.totalorder %s253_s18, %s365_s2  ;;  %p371_p2 = scmp.lt.s32.totalorder %s365_s2, %s365_s2 }
   0xe   :  { %340 = vmatprep.subr.bf16.mxu0 %v339_v16 }
   0xf   :  { %p372_p3 = por %p371_p2, %p370_p1 }
  0x11   :  { %342 = vmatpush3.bf16.msra.mxu0 %v339_v16  ;;  %p373_p4 = pnand %p372_p3, %p366_p0 }
  0x12   :  { %344 = vmatprep.subr.bf16.mxu0 %v343_v19 }
  0x15   :  { %346 = vmatpush3.bf16.msra.mxu0 %v343_v19 }
  0x16   :  { %348 = vmatprep.subr.bf16.mxu0 %v347_v22 }
  0x19   :  { %350 = vmatpush3.bf16.msra.mxu0 %v347_v22 }
  0x1a   :  { %352 = vmatprep.subr.bf16.mxu0 %v351_v25 }
  0x1d   :  { %354 = vmatpush3.bf16.msra.mxu0 %v351_v25 }
  0x1e   :  { %356 = vmatprep.subr.bf16.mxu0 %v355_v28 }
  0x21   :  { %358 = vmatpush3.bf16.msra.mxu0 %v355_v28 }
  0x24   :  { %320 = vmatmul.mubr.f32.vlgmr.msra.gmra.mrb[0].mxu0 %v48_v29 }
  0x86   :  { %v141_v37 = vpop.permute.xlu0 %140 }
  0x8a   :  { %v146_v38 = vpop.permute.xlu0 %145 }
  0xf7   :  { %v321_v33 = vpop.f32.mrb[0].mxu0 }
  0xf8   :  { %v127_v34 = vadd.f32 %v321_v33, %v50_v31  ;;  %v117_v35 = vpop.f32.mrb[1].mxu0 }
  0xf9   :  { %v126_v36 = vadd.f32 %v117_v35, %v49_v32 }
  0xfa   :  { %130 = vst.msk [vmem:[#allocation2 + $0x8] sm:$0xff] %vm28_vm0, %v127_v34 }
  0xfb   :  { %129 = vst.msk [vmem:[#allocation2] sm:$0xff] %vm28_vm0, %v126_v36 }
 0x101   :  { %v135_v39 = vld [vmem:[#allocation2 + $0x8] sm:$0xff] }
 0x102   :  { %v134_v40 = vld [vmem:[#allocation2] sm:$0xff]  ;;  %v149_v41 = vmul.f32 %v146_v38, %v135_v39 }
 0x103   :  { %v148_v43 = vmul.f32 %v141_v37, %v134_v40 }
 0x104   :  { %v153_v46 = vadd.f32 %v151_v44, %v149_v41 }
 0x105   :  { %v152_v45 = vadd.f32 %v150_v42, %v148_v43 }
 0x107   :  { %324 = vmatprep.mubr.msk.f32.mxu1 %vm28_vm0, %v152_v45 }
 0x108   :  { %325 = vmatmul.mubr.msk.f32.vlgmr.msra.gmra.mrb[0].mxu1 %vm28_vm0, %v153_v46 }
 0x1db   :  { %v326_v48 = vpop.f32.mrb[0].mxu1 }
 0x1dc   :  { %v240_v49 = vadd.f32 %v326_v48, %v263_v47  ;;  %v234_v50 = vpop.f32.mrb[1].mxu1 }
 0x1dd   :  { %v235_v51 = vadd.f32 %v263_v47, %v234_v50 }
 0x1de   :  { %v244_v52 = vmax.f32 %v240_v49, 0.0 }
 0x1df   :  { %v243_v53 = vmax.f32 %v235_v51, 0.0 }
 0x1e0   :  { %246 = vst [vmem:[#allocation3 + $0x8] sm:$0xff] %v244_v52 }
 0x1e1   :  { %245 = vst [vmem:[#allocation3] sm:$0xff] %v243_v53 }
 0x1e2   :  { %376 = shalt.err (!%p373_p4)
}
 0x1e3   :  { %s377_s20 = scalar_lea.hbm %s525_s6, 256 }
 0x1e4   :  { %p378_p5 = scmp.ne.s32.totalorder %s525_s6, %s377_s20  ;;  %p381_p6 = scmp.lt.u32.totalorder %s377_s20, %s525_s6 }
 0x1e6   :  { %p383_p7 = pnand %p381_p6, %p378_p5 }
 0x1e8   :  { %386 = shalt.err (!%p383_p7)
}
 0x1e9   :  { %s392_s25 = smov 128   ;;  %s393_s3 = smov 8  }
 0x1ea   :  { %258 = dma.vmem_to_hbm [thread:$0]  %s253_s18, 256, %s525_s6, [#allocation4], %s392_s25, %s392_s25, %s393_s3  }
 0x1eb   :  { %387 = dma.done.wait [#allocation4], 256  }
 0x1ec   :  { %388 = vsyncadd [#allocation4], 4294967040 }
 0x1ed   :  { %262 = vsyncpa [#allocation4], 1 }

</bundles_post_ra>
